<compile_context>
chip_gen: v7x
topology: tpu7x:2x2x1
jax: 0.10.0
libtpu: 0.0.40
codegen_flags: <defaults>
</compile_context>

<pallas_src>
import jax
import jax.numpy as jnp
from jax.experimental import pallas as pl
from jax.experimental.pallas import tpu as pltpu


def _round_up(x, m):
    return -(-x // m) * m


def _dqn_kernel(x_ref, w1_ref, b1_ref, w2_ref, b2_ref, w3_ref, b3_ref, o_ref):
    # x tile: (TB, F) f32 straight from HBM; all dots accumulate in f32.
    x = x_ref[...]
    h1 = jnp.dot(x, w1_ref[...], preferred_element_type=jnp.float32) + b1_ref[...]
    h1 = jnp.maximum(h1, 0.0)                                          # (TB, 24)
    h2 = jnp.dot(h1, w2_ref[...], preferred_element_type=jnp.float32) + b2_ref[...]
    h2 = jnp.maximum(h2, 0.0)                                          # (TB, 32)
    out = jnp.dot(h2, w3_ref[...], preferred_element_type=jnp.float32) + b3_ref[...]
    o_ref[...] = out.astype(o_ref.dtype)                               # (TB, A_pad)


@jax.jit
def simple_dqn_forward(s_nchw, params):
    """s_nchw: (B, 3, H, W) float32. Returns (B, num_actions) float32."""
    w1, b1, w2, b2, w3, b3 = params
    B = s_nchw.shape[0]
    F_in, H1 = w1.shape            # (3*H*W, 24)
    H2 = w2.shape[1]               # 32
    A = w3.shape[1]                # num_actions

    x = s_nchw.reshape(B, -1)      # flatten(start_dim=1); f32, no cast, no pad

    # ---- pad output columns to a full 128-lane block (lane-dense stores) ----
    A_pad = _round_up(A, 128)
    w3p = jnp.pad(w3, ((0, 0), (0, A_pad - A)))
    b3p = jnp.pad(b3, ((0, 0), (0, A_pad - A)))

    # ---- batch tile size -----------------------------------------------------
    # ~B/4 rows per step (>=2, usually >=4 grid steps for v7x's two TCs),
    # capped at 2048 and by a ~24 MiB VMEM budget for the double-buffered
    # f32 x tile + f32 out tile (leaves headroom under the 32 MiB scoped limit).
    bytes_per_row = F_in * 4 * 2 + A_pad * 4 * 2
    tb_vmem_cap = max(16, ((24 * 1024 * 1024) // bytes_per_row) // 16 * 16)
    TB = min(2048, tb_vmem_cap, max(16, _round_up(pl.cdiv(B, 4), 16)))
    grid = (pl.cdiv(B, TB),)       # ragged trailing block is masked by Pallas

    flops = 2 * B * (F_in * H1 + H1 * H2 + H2 * A_pad)
    bytes_accessed = (B * F_in * 4                                   # x (f32)
                      + (F_in * H1 + H1 * H2 + H2 * A_pad) * 4       # weights (f32)
                      + (H1 + H2 + A_pad) * 4                        # biases (f32)
                      + B * A_pad * 4)                               # output (f32)

    out = pl.pallas_call(
        _dqn_kernel,
        out_shape=jax.ShapeDtypeStruct((B, A_pad), jnp.float32),
        grid=grid,
        in_specs=[
            pl.BlockSpec((TB, F_in),  lambda i: (i, 0)),    # x: tiled over batch
            pl.BlockSpec((F_in, H1),  lambda i: (0, 0)),    # w1: resident
            pl.BlockSpec((1, H1),     lambda i: (0, 0)),    # b1: resident
            pl.BlockSpec((H1, H2),    lambda i: (0, 0)),    # w2: resident
            pl.BlockSpec((1, H2),     lambda i: (0, 0)),    # b2: resident
            pl.BlockSpec((H2, A_pad), lambda i: (0, 0)),    # w3 (padded): resident
            pl.BlockSpec((1, A_pad),  lambda i: (0, 0)),    # b3 (padded): resident
        ],
        out_specs=pl.BlockSpec((TB, A_pad), lambda i: (i, 0)),
        compiler_params=pltpu.CompilerParams(
            dimension_semantics=("parallel",),     # v7x: shard batch over 2 TCs
            vmem_limit_bytes=32 * 1024 * 1024,     # safe on v5e's 16 MiB default
        ),
        cost_estimate=pl.CostEstimate(
            flops=flops, transcendentals=0, bytes_accessed=bytes_accessed),
    )(x, w1, b1, w2, b2, w3p, b3p)

    # Padded columns are zero-filled and never consumed: slice them off here.
    return out[:, :A]


def init_params(key, img_height, img_width, num_actions):
    """Deterministic init matching nn.Linear defaults (weights stored as (in, out))."""
    in_f = img_height * img_width * 3
    dims = [(in_f, 24), (24, 32), (32, num_actions)]
    params = []
    for i, (fan_in, fan_out) in enumerate(dims):
        kw, kb = jax.random.split(jax.random.fold_in(key, i))
        bound = 1.0 / jnp.sqrt(fan_in)  # PyTorch default U(-1/sqrt(fan_in), +1/sqrt(fan_in))
        w = jax.random.uniform(kw, (fan_in, fan_out), jnp.float32, -bound, bound)
        b = jax.random.uniform(kb, (1, fan_out), jnp.float32, -bound, bound)
        params.extend([w, b])
    return tuple(params)


if __name__ == "__main__":
    key = jax.random.PRNGKey(0)
    img_height, img_width, num_actions = 16, 16, 4
    batch = 2

    params = init_params(key, img_height, img_width, num_actions)
    x = jax.random.normal(jax.random.fold_in(key, 100),
                          (batch, 3, img_height, img_width), jnp.float32)

    out = simple_dqn_forward(x, params)
    out = jax.block_until_ready(out)

    # Pure-JAX f32 reference.
    w1, b1, w2, b2, w3, b3 = params
    xf = x.reshape(batch, -1)
    ref = jnp.maximum(xf @ w1 + b1, 0.0)
    ref = jnp.maximum(ref @ w2 + b2, 0.0)
    ref = ref @ w3 + b3

    assert out.shape == (batch, num_actions)
    assert jnp.allclose(out, ref, atol=5e-2, rtol=5e-2), (
        f"max abs err {jnp.max(jnp.abs(out - ref))}")

    print("KERNEL_OK")
</pallas_src>

<mosaic_0001>
module attributes {stable_mosaic.version = 11 : i64} {
  func.func @_dqn_kernel(%arg0: i32, %arg1: memref<16x768xf32, #tpu.memory_space<vmem>>, %arg2: memref<768x24xf32, #tpu.memory_space<vmem>>, %arg3: memref<1x24xf32, #tpu.memory_space<vmem>>, %arg4: memref<24x32xf32, #tpu.memory_space<vmem>>, %arg5: memref<1x32xf32, #tpu.memory_space<vmem>>, %arg6: memref<32x128xf32, #tpu.memory_space<vmem>>, %arg7: memref<1x128xf32, #tpu.memory_space<vmem>>, %arg8: memref<16x128xf32, #tpu.memory_space<vmem>>) attributes {dimension_semantics = [#tpu.dimension_semantics<parallel>], iteration_bounds = array<i64: 1>, scalar_prefetch = 0 : i64, scratch_operands = 0 : i64, tpu.core_type = #tpu.core_type<tc>, window_params = [{transform_indices = @transform_0, window_bounds = array<i64: 16, 768>}, {pipeline_mode = #tpu.pipeline_mode<synchronous>, transform_indices = @transform_1, window_bounds = array<i64: 768, 24>}, {pipeline_mode = #tpu.pipeline_mode<synchronous>, transform_indices = @transform_2, window_bounds = array<i64: 1, 24>}, {pipeline_mode = #tpu.pipeline_mode<synchronous>, transform_indices = @transform_3, window_bounds = array<i64: 24, 32>}, {pipeline_mode = #tpu.pipeline_mode<synchronous>, transform_indices = @transform_4, window_bounds = array<i64: 1, 32>}, {pipeline_mode = #tpu.pipeline_mode<synchronous>, transform_indices = @transform_5, window_bounds = array<i64: 32, 128>}, {pipeline_mode = #tpu.pipeline_mode<synchronous>, transform_indices = @transform_6, window_bounds = array<i64: 1, 128>}, {transform_indices = @transform_7, window_bounds = array<i64: 16, 128>}]} {
    %c0 = arith.constant 0 : index
    %c0_0 = arith.constant 0 : index
    %0 = vector.load %arg1[%c0, %c0_0] : memref<16x768xf32, #tpu.memory_space<vmem>>, vector<16x768xf32>
    %c0_1 = arith.constant 0 : index
    %c0_2 = arith.constant 0 : index
    %1 = vector.load %arg2[%c0_1, %c0_2] : memref<768x24xf32, #tpu.memory_space<vmem>>, vector<768x24xf32>
    %cst = arith.constant dense<0.000000e+00> : vector<16x24xf32>
    %2 = tpu.matmul %0, %1, %cst {dimension_numbers = #tpu.dot_dimension_numbers<[1], [0], [0], [1], [0, 0, 1, 1], [], []>} : vector<16x768xf32>, vector<768x24xf32>, vector<16x24xf32> -> vector<16x24xf32>
    %c0_3 = arith.constant 0 : index
    %c0_4 = arith.constant 0 : index
    %3 = vector.load %arg3[%c0_3, %c0_4] : memref<1x24xf32, #tpu.memory_space<vmem>>, vector<1x24xf32>
    %4 = vector.broadcast %3 : vector<1x24xf32> to vector<16x24xf32>
    %5 = arith.addf %2, %4 : vector<16x24xf32>
    %cst_5 = arith.constant 0.000000e+00 : f32
    %6 = vector.broadcast %cst_5 : f32 to vector<16x24xf32>
    %7 = arith.maximumf %5, %6 : vector<16x24xf32>
    %c0_6 = arith.constant 0 : index
    %c0_7 = arith.constant 0 : index
    %8 = vector.load %arg4[%c0_6, %c0_7] : memref<24x32xf32, #tpu.memory_space<vmem>>, vector<24x32xf32>
    %cst_8 = arith.constant dense<0.000000e+00> : vector<16x32xf32>
    %9 = tpu.matmul %7, %8, %cst_8 {dimension_numbers = #tpu.dot_dimension_numbers<[1], [0], [0], [1], [0, 0, 1, 1], [], []>} : vector<16x24xf32>, vector<24x32xf32>, vector<16x32xf32> -> vector<16x32xf32>
    %c0_9 = arith.constant 0 : index
    %c0_10 = arith.constant 0 : index
    %10 = vector.load %arg5[%c0_9, %c0_10] : memref<1x32xf32, #tpu.memory_space<vmem>>, vector<1x32xf32>
    %11 = vector.broadcast %10 : vector<1x32xf32> to vector<16x32xf32>
    %12 = arith.addf %9, %11 : vector<16x32xf32>
    %cst_11 = arith.constant 0.000000e+00 : f32
    %13 = vector.broadcast %cst_11 : f32 to vector<16x32xf32>
    %14 = arith.maximumf %12, %13 : vector<16x32xf32>
    %c0_12 = arith.constant 0 : index
    %c0_13 = arith.constant 0 : index
    %15 = vector.load %arg6[%c0_12, %c0_13] : memref<32x128xf32, #tpu.memory_space<vmem>>, vector<32x128xf32>
    %cst_14 = arith.constant dense<0.000000e+00> : vector<16x128xf32>
    %16 = tpu.matmul %14, %15, %cst_14 {dimension_numbers = #tpu.dot_dimension_numbers<[1], [0], [0], [1], [0, 0, 1, 1], [], []>} : vector<16x32xf32>, vector<32x128xf32>, vector<16x128xf32> -> vector<16x128xf32>
    %c0_15 = arith.constant 0 : index
    %c0_16 = arith.constant 0 : index
    %17 = vector.load %arg7[%c0_15, %c0_16] : memref<1x128xf32, #tpu.memory_space<vmem>>, vector<1x128xf32>
    %18 = vector.broadcast %17 : vector<1x128xf32> to vector<16x128xf32>
    %19 = arith.addf %16, %18 : vector<16x128xf32>
    %c0_17 = arith.constant 0 : index
    %c0_18 = arith.constant 0 : index
    %20 = vector.load %arg8[%c0_17, %c0_18] : memref<16x128xf32, #tpu.memory_space<vmem>>, vector<16x128xf32>
    tpu.vector_store %arg8[%c0_17, %c0_18], %19 {strides = array<i32>} : memref<16x128xf32, #tpu.memory_space<vmem>>, vector<16x128xf32>,
    return
  }
  func.func @transform_0(%arg0: i32) -> (i32, i32) {
    %c0_i32 = arith.constant 0 : i32
    %c0_i32_0 = arith.constant 0 : i32
    return %arg0, %c0_i32 : i32, i32
  }
  func.func @transform_1(%arg0: i32) -> (i32, i32) {
    %c0_i32 = arith.constant 0 : i32
    %c0_i32_0 = arith.constant 0 : i32
    %c0_i32_1 = arith.constant 0 : i32
    return %c0_i32, %c0_i32_0 : i32, i32
  }
  func.func @transform_2(%arg0: i32) -> (i32, i32) {
    %c0_i32 = arith.constant 0 : i32
    %c0_i32_0 = arith.constant 0 : i32
    %c0_i32_1 = arith.constant 0 : i32
    return %c0_i32, %c0_i32_0 : i32, i32
  }
  func.func @transform_3(%arg0: i32) -> (i32, i32) {
    %c0_i32 = arith.constant 0 : i32
    %c0_i32_0 = arith.constant 0 : i32
    %c0_i32_1 = arith.constant 0 : i32
    return %c0_i32, %c0_i32_0 : i32, i32
  }
  func.func @transform_4(%arg0: i32) -> (i32, i32) {
    %c0_i32 = arith.constant 0 : i32
    %c0_i32_0 = arith.constant 0 : i32
    %c0_i32_1 = arith.constant 0 : i32
    return %c0_i32, %c0_i32_0 : i32, i32
  }
  func.func @transform_5(%arg0: i32) -> (i32, i32) {
    %c0_i32 = arith.constant 0 : i32
    %c0_i32_0 = arith.constant 0 : i32
    %c0_i32_1 = arith.constant 0 : i32
    return %c0_i32, %c0_i32_0 : i32, i32
  }
  func.func @transform_6(%arg0: i32) -> (i32, i32) {
    %c0_i32 = arith.constant 0 : i32
    %c0_i32_0 = arith.constant 0 : i32
    %c0_i32_1 = arith.constant 0 : i32
    return %c0_i32, %c0_i32_0 : i32, i32
  }
  func.func @transform_7(%arg0: i32) -> (i32, i32) {
    %c0_i32 = arith.constant 0 : i32
    %c0_i32_0 = arith.constant 0 : i32
    return %arg0, %c0_i32 : i32, i32
  }
}

</mosaic_0001>

<bundles_post_ra>
// kernel: simple_dqn_forward.1
= control target key start
LH: loop header
LB: loop body
LE: loop exit
PB: predicated region body
PF: predicated region fallthrough
CT: control target
= control target key end

     0   :  { %12 = vsyncpa [#allocation3], 0  ;;  %v1018_v51 = vmov 1983009808   ;;  %v169_v53 = vlaneseq  ;;  %vm519_vm0 = vcmask 195584   ;;  %vm614_vm1 = vcmask 261120   ;;  %s1442_s0 = inlined_call_operand.vmem [shape: f32[2,768], index: 0, kind: input, shape index: {}]   ;;  %s1443_s1 = inlined_call_operand.vmem [shape: f32[768,24], index: 1, kind: input, shape index: {}]   ;;  %s1444_s2 = inlined_call_operand.vmem [shape: f32[1,24], index: 2, kind: input, shape index: {}]   ;;  %s1445_s3 = inlined_call_operand.vmem [shape: f32[24,32], index: 3, kind: input, shape index: {}]   ;;  %s1446_s4 = inlined_call_operand.vmem [shape: f32[1,32], index: 4, kind: input, shape index: {}]   ;;  %s1447_s5 = inlined_call_operand.vmem [shape: f32[32,128], index: 5, kind: input, shape index: {}]   ;;  %s1448_s6 = inlined_call_operand.vmem [shape: f32[1,128], index: 6, kind: input, shape index: {}]   ;;  %s1449_s7 = inlined_call_operand.hbm [shape: f32[2,128], index: 7, kind: output, shape index: {}]  }
   0x1   :  { %v59_v0 = vld [vmem:[%s1443_s1 + $0x80] sm:$0xff]  ;;  %v60_v1 = vld [vmem:[%s1443_s1 + $0x88] sm:$0xff]  ;;  %v61_v12 = vld [vmem:[%s1443_s1 + $0x90] sm:$0xff]  ;;  %v167_v52 = vunpack.c.l.s4 %v1018_v51 }
   0x2   :  { %v866_v2 = vpack.c.bf16 %v60_v1, %v59_v0  ;;  %v43_v3 = vld [vmem:[%s1443_s1] sm:$0xff]  ;;  %v44_v4 = vld [vmem:[%s1443_s1 + $0x8] sm:$0xff]  ;;  %v62_v13 = vld [vmem:[%s1443_s1 + $0x98] sm:$0xff] }
   0x3   :  { %v91_v5 = vld [vmem:[%s1443_s1 + $0x180] sm:$0xff]  ;;  %v868_v6 = vpack.c.bf16 %v44_v4, %v43_v3  ;;  %v92_v7 = vld [vmem:[%s1443_s1 + $0x188] sm:$0xff]  ;;  %v45_v14 = vld [vmem:[%s1443_s1 + $0x10] sm:$0xff]  ;;  %v870_v15 = vpack.c.bf16 %v62_v13, %v61_v12  ;;  %v170_v3 = vshrl.u32 %v169_v53, 7 }
   0x4   :  { %v75_v8 = vld [vmem:[%s1443_s1 + $0x100] sm:$0xff]  ;;  %v76_v9 = vld [vmem:[%s1443_s1 + $0x108] sm:$0xff]  ;;  %867 = vmatprep.subr.bf16.mxu0 %v866_v2  ;;  %v898_v10 = vpack.c.bf16 %v92_v7, %v91_v5  ;;  %v46_v16 = vld [vmem:[%s1443_s1 + $0x18] sm:$0xff]  ;;  %v168_v2 = vunpack.c.0.s8 %v167_v52 }
   0x5   :  { %v900_v11 = vpack.c.bf16 %v76_v9, %v75_v8  ;;  %869 = vmatpush3.bf16.msra.mxu0 %v868_v6  ;;  %v93_v17 = vld [vmem:[%s1443_s1 + $0x190] sm:$0xff]  ;;  %v94_v18 = vld [vmem:[%s1443_s1 + $0x198] sm:$0xff]  ;;  %v872_v19 = vpack.c.bf16 %v46_v16, %v45_v14  ;;  %v63_v23 = vld [vmem:[%s1443_s1 + $0xa0] sm:$0xff] }
   0x6   :  { %899 = vmatprep.subr.bf16.mxu1 %v898_v10  ;;  %v902_v20 = vpack.c.bf16 %v94_v18, %v93_v17  ;;  %v77_v21 = vld [vmem:[%s1443_s1 + $0x110] sm:$0xff]  ;;  %v78_v22 = vld [vmem:[%s1443_s1 + $0x118] sm:$0xff]  ;;  %871 = vmatprep.subr.bf16.mxu0 %v870_v15  ;;  %v64_v25 = vld [vmem:[%s1443_s1 + $0xa8] sm:$0xff] }
   0x7   :  { %901 = vmatpush3.bf16.msra.mxu1 %v900_v11  ;;  %v904_v24 = vpack.c.bf16 %v78_v22, %v77_v21  ;;  %v47_v26 = vld [vmem:[%s1443_s1 + $0x20] sm:$0xff]  ;;  %v48_v27 = vld [vmem:[%s1443_s1 + $0x28] sm:$0xff]  ;;  %v874_v28 = vpack.c.bf16 %v64_v25, %v63_v23  ;;  %v65_v35 = vld [vmem:[%s1443_s1 + $0xb0] sm:$0xff] }
   0x8   :  { %903 = vmatprep.subr.bf16.mxu1 %v902_v20  ;;  %v95_v29 = vld [vmem:[%s1443_s1 + $0x1a0] sm:$0xff]  ;;  %v96_v30 = vld [vmem:[%s1443_s1 + $0x1a8] sm:$0xff]  ;;  %v876_v32 = vpack.c.bf16 %v48_v27, %v47_v26  ;;  %v66_v36 = vld [vmem:[%s1443_s1 + $0xb8] sm:$0xff]  ;;  %v1230_v20 = vsub.s32 %v168_v2, %v170_v3 }
   0x9   :  { %v79_v31 = vld [vmem:[%s1443_s1 + $0x120] sm:$0xff]  ;;  %873 = vmatpush3.bf16.msra.mxu0 %v872_v19  ;;  %v906_v33 = vpack.c.bf16 %v96_v30, %v95_v29  ;;  %v80_v34 = vld [vmem:[%s1443_s1 + $0x128] sm:$0xff]  ;;  %v878_v37 = vpack.c.bf16 %v66_v36, %v65_v35  ;;  %v49_v38 = vld [vmem:[%s1443_s1 + $0x30] sm:$0xff] }
   0xa   :  { %875 = vmatprep.subr.bf16.mxu0 %v874_v28  ;;  %v50_v39 = vld [vmem:[%s1443_s1 + $0x38] sm:$0xff]  ;;  %v97_v40 = vld [vmem:[%s1443_s1 + $0x1b0] sm:$0xff]  ;;  %v908_v41 = vpack.c.bf16 %v80_v34, %v79_v31  ;;  %v67_v46 = vld [vmem:[%s1443_s1 + $0xc0] sm:$0xff] }
   0xb   :  { %905 = vmatpush3.bf16.msra.mxu1 %v904_v24  ;;  %v98_v42 = vld [vmem:[%s1443_s1 + $0x1b8] sm:$0xff]  ;;  %v81_v43 = vld [vmem:[%s1443_s1 + $0x130] sm:$0xff]  ;;  %v68_v47 = vld [vmem:[%s1443_s1 + $0xc8] sm:$0xff]  ;;  %v880_v48 = vpack.c.bf16 %v50_v39, %v49_v38 }
   0xc   :  { %907 = vmatprep.subr.bf16.mxu1 %v906_v33  ;;  %v910_v44 = vpack.c.bf16 %v98_v42, %v97_v40  ;;  %v82_v45 = vld [vmem:[%s1443_s1 + $0x138] sm:$0xff]  ;;  %v99_v49 = vld [vmem:[%s1443_s1 + $0x1c0] sm:$0xff]  ;;  %v100_v50 = vld [vmem:[%s1443_s1 + $0x1c8] sm:$0xff]  ;;  %v882_v54 = vpack.c.bf16 %v68_v47, %v67_v46 }
   0xd   :  { %877 = vmatpush3.bf16.msra.mxu0 %v876_v32  ;;  %v51_v55 = vld [vmem:[%s1443_s1 + $0x40] sm:$0xff]  ;;  %v52_v56 = vld [vmem:[%s1443_s1 + $0x48] sm:$0xff]  ;;  %v912_v57 = vpack.c.bf16 %v82_v45, %v81_v43  ;;  %v69_v58 = vld [vmem:[%s1443_s1 + $0xd0] sm:$0xff]  ;;  %v914_v60 = vpack.c.bf16 %v100_v50, %v99_v49 }
   0xe   :  { %879 = vmatprep.subr.bf16.mxu0 %v878_v37  ;;  %v70_v59 = vld [vmem:[%s1443_s1 + $0xd8] sm:$0xff]  ;;  %v83_v61 = vld [vmem:[%s1443_s1 + $0x140] sm:$0xff]  ;;  %v84_v62 = vld [vmem:[%s1443_s1 + $0x148] sm:$0xff]  ;;  %v884_v63 = vpack.c.bf16 %v52_v56, %v51_v55 }
   0xf   :  { %909 = vmatpush3.bf16.msra.mxu1 %v908_v41  ;;  %v101_v0 = vld [vmem:[%s1443_s1 + $0x1d0] sm:$0xff]  ;;  %v102_v1 = vld [vmem:[%s1443_s1 + $0x1d8] sm:$0xff]  ;;  %v886_v4 = vpack.c.bf16 %v70_v59, %v69_v58  ;;  %v916_v8 = vpack.c.bf16 %v84_v62, %v83_v61  ;;  %v71_v10 = vld [vmem:[%s1443_s1 + $0xe0] sm:$0xff] }
  0x10   :  { %911 = vmatprep.subr.bf16.mxu1 %v910_v44  ;;  %v53_v5 = vld [vmem:[%s1443_s1 + $0x50] sm:$0xff]  ;;  %v54_v6 = vld [vmem:[%s1443_s1 + $0x58] sm:$0xff]  ;;  %v72_v11 = vld [vmem:[%s1443_s1 + $0xe8] sm:$0xff]  ;;  %v918_v12 = vpack.c.bf16 %v102_v1, %v101_v0 }
  0x11   :  { %881 = vmatpush3.bf16.msra.mxu0 %v880_v48  ;;  %v85_v7 = vld [vmem:[%s1443_s1 + $0x150] sm:$0xff]  ;;  %v86_v9 = vld [vmem:[%s1443_s1 + $0x158] sm:$0xff]  ;;  %v55_v13 = vld [vmem:[%s1443_s1 + $0x60] sm:$0xff]  ;;  %v888_v16 = vpack.c.bf16 %v54_v6, %v53_v5  ;;  %v890_v21 = vpack.c.bf16 %v72_v11, %v71_v10 }
  0x12   :  { %883 = vmatprep.subr.bf16.mxu0 %v882_v54  ;;  %v56_v14 = vld [vmem:[%s1443_s1 + $0x68] sm:$0xff]  ;;  %v103_v15 = vld [vmem:[%s1443_s1 + $0x1e0] sm:$0xff]  ;;  %v73_v18 = vld [vmem:[%s1443_s1 + $0xf0] sm:$0xff]  ;;  %v920_v22 = vpack.c.bf16 %v86_v9, %v85_v7 }
  0x13   :  { %913 = vmatpush3.bf16.msra.mxu1 %v912_v57  ;;  %v104_v17 = vld [vmem:[%s1443_s1 + $0x1e8] sm:$0xff]  ;;  %v74_v19 = vld [vmem:[%s1443_s1 + $0xf8] sm:$0xff]  ;;  %v87_v26 = vld [vmem:[%s1443_s1 + $0x160] sm:$0xff]  ;;  %v892_v29 = vpack.c.bf16 %v56_v14, %v55_v13 }
  0x14   :  { %915 = vmatprep.subr.bf16.mxu1 %v914_v60  ;;  %v978_v23 = vld [vmem:[%s1442_s0] ss:$12 sps:$4 sm:$0xff]   ;;  %v980_v24 = vld [vmem:[%s1442_s0 + $0x18] ss:$12 sps:$4 sm:$0xff]   ;;  %v922_v25 = vpack.c.bf16 %v104_v17, %v103_v15  ;;  %v105_v28 = vld [vmem:[%s1443_s1 + $0x1f0] sm:$0xff]  ;;  %v894_v35 = vpack.c.bf16 %v74_v19, %v73_v18 }
  0x15   :  { %885 = vmatpush3.bf16.msra.mxu0 %v884_v63  ;;  %v88_v27 = vld [vmem:[%s1443_s1 + $0x168] sm:$0xff]  ;;  %v106_v30 = vld [vmem:[%s1443_s1 + $0x1f8] sm:$0xff]  ;;  %v172_v31 = vrot.slane %v978_v23, %v1230_v20  ;;  %v186_v32 = vrot.slane %v980_v24, %v1230_v20  ;;  %v982_v33 = vld [vmem:[%s1442_s0 + $0x4] ss:$12 sps:$4 sm:$0xff]  }
  0x16   :  { %887 = vmatprep.subr.bf16.mxu0 %v886_v4  ;;  %v983_v34 = vld [vmem:[%s1442_s0 + $0x1c] ss:$12 sps:$4 sm:$0xff]   ;;  %v57_v36 = vld [vmem:[%s1443_s1 + $0x70] sm:$0xff]  ;;  %v924_v38 = vpack.c.bf16 %v88_v27, %v87_v26  ;;  %v123_v40 = vld [vmem:[%s1443_s1 + $0x280] sm:$0xff]  ;;  %v179_v42 = vrot.slane %v982_v33, %v1230_v20  ;;  %v926_v44 = vpack.c.bf16 %v106_v30, %v105_v28 }
  0x17   :  { %917 = vmatpush3.bf16.msra.mxu1 %v916_v8  ;;  %v58_v37 = vld [vmem:[%s1443_s1 + $0x78] sm:$0xff]  ;;  %v195_v39 = vcombine.high %v172_v31, %v186_v32  ;;  %v124_v41 = vld [vmem:[%s1443_s1 + $0x288] sm:$0xff]  ;;  %v193_v43 = vrot.slane %v983_v34, %v1230_v20  ;;  %v89_v45 = vld [vmem:[%s1443_s1 + $0x170] sm:$0xff]  ;;  %v194_v55 = vcombine.low %v172_v31, %v186_v32 }
  0x18   :  { %919 = vmatprep.subr.bf16.mxu1 %v918_v12  ;;  %v90_v46 = vld [vmem:[%s1443_s1 + $0x178] sm:$0xff]  ;;  %v896_v47 = vpack.c.bf16 %v58_v37, %v57_v36  ;;  %v930_v49 = vpack.c.bf16 %v124_v41, %v123_v40  ;;  %v107_v50 = vld [vmem:[%s1443_s1 + $0x200] sm:$0xff]  ;;  %v108_v51 = vld [vmem:[%s1443_s1 + $0x208] sm:$0xff] }
  0x19   :  { %889 = vmatpush3.bf16.msra.mxu0 %v888_v16  ;;  %346 = vmatprep.mubr.f32.mxu0 %v195_v39  ;;  %v197_v48 = vcombine.high %v179_v42, %v193_v43  ;;  %v928_v52 = vpack.c.bf16 %v90_v46, %v89_v45  ;;  %v125_v53 = vld [vmem:[%s1443_s1 + $0x290] sm:$0xff]  ;;  %v126_v54 = vld [vmem:[%s1443_s1 + $0x298] sm:$0xff]  ;;  %v932_v56 = vpack.c.bf16 %v108_v51, %v107_v50  ;;  %v127_v61 = vld [vmem:[%s1443_s1 + $0x2a0] sm:$0xff] }
  0x1a   :  { %891 = vmatprep.subr.bf16.mxu0 %v890_v21  ;;  %v109_v57 = vld [vmem:[%s1443_s1 + $0x210] sm:$0xff]  ;;  %v110_v58 = vld [vmem:[%s1443_s1 + $0x218] sm:$0xff]  ;;  %v196_v59 = vcombine.low %v179_v42, %v193_v43  ;;  %v934_v60 = vpack.c.bf16 %v126_v54, %v125_v53  ;;  %v128_v62 = vld [vmem:[%s1443_s1 + $0x2a8] sm:$0xff] }
  0x1b   :  { %921 = vmatpush3.bf16.msra.mxu1 %v920_v22  ;;  %421 = vmatprep.mubr.f32.mxu1 %v197_v48  ;;  %v984_v63 = vld [vmem:[%s1442_s0 + $0x30] ss:$12 sps:$4 sm:$0xff]   ;;  %v986_v0 = vld [vmem:[%s1442_s0 + $0x48] ss:$12 sps:$4 sm:$0xff]   ;;  %v936_v2 = vpack.c.bf16 %v110_v58, %v109_v57  ;;  %v938_v3 = vpack.c.bf16 %v128_v62, %v127_v61  ;;  %v111_v4 = vld [vmem:[%s1443_s1 + $0x220] sm:$0xff] }
  0x1c   :  { %923 = vmatprep.subr.bf16.mxu1 %v922_v25  ;;  %v988_v1 = vld [vmem:[%s1442_s0 + $0x34] ss:$12 sps:$4 sm:$0xff]   ;;  %v112_v5 = vld [vmem:[%s1443_s1 + $0x228] sm:$0xff]  ;;  %v130_v8 = vld [vmem:[%s1443_s1 + $0x2b8] sm:$0xff]  ;;  %v226_v9 = vrot.slane %v984_v63, %v1230_v20  ;;  %v240_v10 = vrot.slane %v986_v0, %v1230_v20 }
  0x1d   :  { %893 = vmatpush3.bf16.msra.mxu0 %v892_v29  ;;  %v989_v6 = vld [vmem:[%s1442_s0 + $0x4c] ss:$12 sps:$4 sm:$0xff]   ;;  %v129_v7 = vld [vmem:[%s1443_s1 + $0x2b0] sm:$0xff]  ;;  %v233_v11 = vrot.slane %v988_v1, %v1230_v20  ;;  %v940_v17 = vpack.c.bf16 %v112_v5, %v111_v4  ;;  %v131_v26 = vld [vmem:[%s1443_s1 + $0x2c0] sm:$0xff] }
  0x1e   :  { %895 = vmatprep.subr.bf16.mxu0 %v894_v35  ;;  %v247_v12 = vrot.slane %v989_v6, %v1230_v20  ;;  %v249_v13 = vcombine.high %v226_v9, %v240_v10  ;;  %v248_v14 = vcombine.low %v226_v9, %v240_v10  ;;  %v990_v15 = vld [vmem:[%s1442_s0 + $0x8] ss:$12 sps:$4 sm:$0xff]   ;;  %v991_v16 = vld [vmem:[%s1442_s0 + $0x20] ss:$12 sps:$4 sm:$0xff]   ;;  %v942_v21 = vpack.c.bf16 %v130_v8, %v129_v7  ;;  %v114_v23 = vld [vmem:[%s1443_s1 + $0x238] sm:$0xff] }
  0x1f   :  { %925 = vmatpush3.bf16.msra.mxu1 %v924_v38  ;;  %v113_v22 = vld [vmem:[%s1443_s1 + $0x230] sm:$0xff]  ;;  %v206_v24 = vrot.slane %v990_v15, %v1230_v20  ;;  %v213_v25 = vrot.slane %v991_v16, %v1230_v20  ;;  %v132_v27 = vld [vmem:[%s1443_s1 + $0x2c8] sm:$0xff]  ;;  %v115_v31 = vld [vmem:[%s1443_s1 + $0x240] sm:$0xff] }
  0x20   :  { %927 = vmatprep.subr.bf16.mxu1 %v926_v44  ;;  %v251_v18 = vcombine.high %v233_v11, %v247_v12  ;;  %v250_v19 = vcombine.low %v233_v11, %v247_v12  ;;  %v944_v29 = vpack.c.bf16 %v114_v23, %v113_v22  ;;  %v946_v30 = vpack.c.bf16 %v132_v27, %v131_v26  ;;  %v116_v32 = vld [vmem:[%s1443_s1 + $0x248] sm:$0xff]  ;;  %v133_v33 = vld [vmem:[%s1443_s1 + $0x2d0] sm:$0xff]  ;;  %v134_v34 = vld [vmem:[%s1443_s1 + $0x2d8] sm:$0xff] }
  0x21   :  { %897 = vmatpush3.bf16.msra.mxu0 %v896_v47  ;;  %v215_v28 = vcombine.high %v206_v24, %v213_v25  ;;  %v948_v35 = vpack.c.bf16 %v116_v32, %v115_v31  ;;  %v950_v36 = vpack.c.bf16 %v134_v34, %v133_v33  ;;  %v117_v37 = vld [vmem:[%s1443_s1 + $0x250] sm:$0xff]  ;;  %v118_v38 = vld [vmem:[%s1443_s1 + $0x258] sm:$0xff]  ;;  %v135_v39 = vld [vmem:[%s1443_s1 + $0x2e0] sm:$0xff] }
  0x22   :  { %931 = vmatprep.subr.bf16.mxu0 %v930_v49  ;;  %v136_v40 = vld [vmem:[%s1443_s1 + $0x2e8] sm:$0xff]  ;;  %v952_v41 = vpack.c.bf16 %v118_v38, %v117_v37  ;;  %v119_v43 = vld [vmem:[%s1443_s1 + $0x260] sm:$0xff]  ;;  %v137_v45 = vld [vmem:[%s1443_s1 + $0x2f0] sm:$0xff] }
  0x23   :  { %929 = vmatpush3.bf16.msra.mxu1 %v928_v52  ;;  %v954_v42 = vpack.c.bf16 %v136_v40, %v135_v39  ;;  %v120_v44 = vld [vmem:[%s1443_s1 + $0x268] sm:$0xff]  ;;  %v138_v46 = vld [vmem:[%s1443_s1 + $0x2f8] sm:$0xff]  ;;  %v121_v51 = vld [vmem:[%s1443_s1 + $0x270] sm:$0xff] }
  0x24   :  { %347 = vmatmul.mubr.f32.vlgmr.msra.gmra.mrb[0].mxu0 %v194_v55  ;;  %v956_v47 = vpack.c.bf16 %v120_v44, %v119_v43  ;;  %v992_v48 = vld [vmem:[%s1442_s0 + $0x38] ss:$12 sps:$4 sm:$0xff]   ;;  %v993_v49 = vld [vmem:[%s1442_s0 + $0x50] ss:$12 sps:$4 sm:$0xff]   ;;  %v958_v50 = vpack.c.bf16 %v138_v46, %v137_v45  ;;  %v604_v63 = vld [vmem:[%s1447_s5 + $0x8] sm:$0xff] }
  0x25   :  { %933 = vmatpush3.bf16.msra.mxu0 %v932_v56  ;;  %351 = vmatprep.mubr.f32.mxu0 %v249_v13  ;;  %v122_v52 = vld [vmem:[%s1443_s1 + $0x278] sm:$0xff]  ;;  %v260_v54 = vrot.slane %v992_v48, %v1230_v20  ;;  %v267_v55 = vrot.slane %v993_v49, %v1230_v20  ;;  %v214_v56 = vcombine.low %v206_v24, %v213_v25  ;;  %v511_v20 = vld [vmem:[%s1445_s3 + $0x10] sm:$0xff]  ;;  %v603_v62 = vld [vmem:[%s1447_s5] sm:$0xff] }
  0x26   :  { %422 = vmatmul.mubr.f32.vlgmr.msra.gmra.mrb[0].mxu1 %v196_v59  ;;  %935 = vmatprep.subr.bf16.mxu0 %v934_v60  ;;  %v960_v53 = vpack.c.bf16 %v122_v52, %v121_v51  ;;  %v509_v59 = vld [vmem:[%s1445_s3] sm:$0xff]  ;;  %v510_v60 = vld [vmem:[%s1445_s3 + $0x8] sm:$0xff]  ;;  %v966_v0 = vpack.c.bf16 %v604_v63, %v603_v62 }
  0x27   :  { %426 = vmatprep.mubr.f32.mxu1 %v251_v18  ;;  %v269_v57 = vcombine.high %v260_v54, %v267_v55  ;;  %v268_v58 = vcombine.low %v260_v54, %v267_v55  ;;  %v962_v61 = vpack.c.bf16 %v510_v60, %v509_v59  ;;  %v715_v32 = vld [vmem:[%s1446_s4] ss:$0 sm:$0xff] }
  0x28   :  { %352 = vmatmul.mubr.f32.gmra.mrb[2].mxu0 %v248_v14  ;;  %v718_v39 = vld [vmem:[%s1448_s6] ss:$0 sm:$0xff] }
  0x29   :  { %937 = vmatpush3.bf16.msra.mxu0 %v936_v2  ;;  %496 = vmatprep.mubr.f32.mxu0 %v215_v28  ;;  %v714_v2 = vld [vmem:[%s1444_s2] ss:$0 sm:$0xff] }
  0x2a   :  { %939 = vmatprep.subr.bf16.mxu0 %v938_v3  ;;  %427 = vmatmul.mubr.f32.gmra.mrb[2].mxu1 %v250_v19 }
  0x2b   :  { %963 = vmatprep.subr.bf16.mxu1 %v962_v61 }
  0x2c   :  { %965 = vmatpush3.bf16.msra.mxu1 %v962_v61 }
  0x2d   :  { %941 = vmatpush3.bf16.msra.mxu0 %v940_v17  ;;  %850 = vmatprep.subr.mxu1 %v511_v20 }
  0x2e   :  { %943 = vmatprep.subr.bf16.mxu0 %v942_v21 }
  0x30   :  { %851 = vmatpush3.msra.mxu1 %v511_v20 }
  0x31   :  { %945 = vmatpush3.bf16.msra.mxu0 %v944_v29  ;;  %967 = vmatprep.subr.bf16.mxu1 %v966_v0  ;;  %v605_v29 = vld [vmem:[%s1447_s5 + $0x10] sm:$0xff] }
  0x32   :  { %947 = vmatprep.subr.bf16.mxu0 %v946_v30  ;;  %v606_v30 = vld [vmem:[%s1447_s5 + $0x18] sm:$0xff] }
  0x33   :  { %v970_v31 = vpack.c.bf16 %v606_v30, %v605_v29 }
  0x35   :  { %949 = vmatpush3.bf16.msra.mxu0 %v948_v35 }
  0x36   :  { %951 = vmatprep.subr.bf16.mxu0 %v950_v36 }
  0x39   :  { %953 = vmatpush3.bf16.msra.mxu0 %v952_v41 }
  0x3a   :  { %955 = vmatprep.subr.bf16.mxu0 %v954_v42 }
  0x3d   :  { %957 = vmatpush3.bf16.msra.mxu0 %v956_v47 }
  0x3e   :  { %959 = vmatprep.subr.bf16.mxu0 %v958_v50 }
  0x41   :  { %961 = vmatpush3.bf16.msra.mxu0 %v960_v53 }
  0x44   :  { %497 = vmatmul.mubr.f32.vlgmr.msra.gmra.mrb[4].mxu0 %v214_v56 }
  0x45   :  { %501 = vmatprep.mubr.f32.mxu0 %v269_v57 }
  0x48   :  { %502 = vmatmul.mubr.f32.gmra.mrb[6].mxu0 %v268_v58 }
  0xf7   :  { %v753_v1 = vpop.f32.mrb[0].mxu0 }
  0xf8   :  { %v754_v3 = vpop.f32.mrb[1].mxu0 }
  0xf9   :  { %v755_v4 = vadd.f32 %v754_v3, %v753_v1  ;;  %v791_v5 = vpop.f32.mrb[0].mxu1 }
  0xfa   :  { %v792_v6 = vpop.f32.mrb[1].mxu1 }
  0xfb   :  { %v349_v7 = vadd.f32 %v755_v4, %v714_v2  ;;  %v793_v8 = vadd.f32 %v792_v6, %v791_v5  ;;  %v756_v10 = vpop.f32.mrb[2].mxu0 }
  0xfc   :  { %v757_v11 = vpop.f32.mrb[3].mxu0 }
  0xfd   :  { %v424_v9 = vadd.f32 %v793_v8, %v349_v7  ;;  %v794_v12 = vpop.f32.mrb[2].mxu1  ;;  %v758_v13 = vadd.f32 %v757_v11, %v756_v10 }
  0xfe   :  { %v795_v14 = vpop.f32.mrb[3].mxu1 }
  0xff   :  { %v796_v15 = vadd.f32 %v795_v14, %v794_v12  ;;  %v354_v16 = vadd.f32 %v758_v13, %v714_v2 }
 0x101   :  { %v429_v17 = vadd.f32 %v796_v15, %v354_v16 }
 0x117   :  { %v829_v18 = vpop.f32.mrb[4].mxu0 }
 0x118   :  { %v830_v19 = vpop.f32.mrb[5].mxu0 }
 0x119   :  { %v831_v21 = vadd.f32 %v830_v19, %v829_v18 }
 0x11b   :  { %v499_v22 = vadd.f32 %v831_v21, %v424_v9  ;;  %v832_v23 = vpop.f32.mrb[6].mxu0 }
 0x11c   :  { %v833_v24 = vpop.f32.mrb[7].mxu0 }
 0x11d   :  { %v507_v25 = vmax.f32 %v499_v22, 0.0  ;;  %v834_v26 = vadd.f32 %v833_v24, %v832_v23 }
 0x11f   :  { %v504_v27 = vadd.f32 %v834_v26, %v429_v17  ;;  %852 = vmatprep.mubr.msk.f32.mxu1 %vm519_vm0, %v507_v25 }
 0x121   :  { %v508_v28 = vmax.f32 %v504_v27, 0.0 }
 0x123   :  { %853 = vmatmul.mubr.msk.f32.vlgmr.msra.gmra.mrb[4].mxu1 %vm519_vm0, %v508_v28 }
 0x124   :  { %969 = vmatpush3.bf16.msra.mxu1 %v966_v0 }
 0x125   :  { %971 = vmatprep.subr.bf16.mxu1 %v970_v31 }
 0x128   :  { %973 = vmatpush3.bf16.msra.mxu1 %v970_v31 }
 0x1f6   :  { %v854_v33 = vpop.f32.mrb[4].mxu1 }
 0x1f7   :  { %v598_v34 = vadd.f32 %v854_v33, %v715_v32  ;;  %v592_v35 = vpop.f32.mrb[5].mxu1 }
 0x1f8   :  { %v593_v36 = vadd.f32 %v715_v32, %v592_v35 }
 0x1f9   :  { %v602_v38 = vmax.f32 %v598_v34, 0.0 }
 0x1fa   :  { %v601_v37 = vmax.f32 %v593_v36, 0.0 }
 0x1fc   :  { %863 = vmatprep.mubr.msk.f32.mxu1 %vm614_vm1, %v601_v37 }
 0x1fd   :  { %864 = vmatmul.mubr.msk.f32.vlgmr.msra.gmra.mrb[6].mxu1 %vm614_vm1, %v602_v38 }
 0x2d0   :  { %v865_v40 = vpop.f32.mrb[6].mxu1 }
 0x2d1   :  { %v693_v41 = vadd.f32 %v865_v40, %v718_v39  ;;  %v687_v42 = vpop.f32.mrb[7].mxu1 }
 0x2d2   :  { %v688_v43 = vadd.f32 %v718_v39, %v687_v42 }
 0x2d3   :  { %697 = vst [vmem:[#allocation2 + $0x8] sm:$0xff] %v693_v41 }
 0x2d4   :  { %696 = vst [vmem:[#allocation2] sm:$0xff] %v688_v43 }
 0x2d5   :  { %702 = vsyncadd [#allocation3], 224  ;;  %s1019_s4 = smov [#allocation2]  }
 0x2d6   :  { %s703_s5 = sshll.u32 %s1019_s4, 4  ;;  %s704_s5 = int_to_ptr.vmem [resolvable:$true] %s703_s5 }
 0x2d7   :  { %s994_s26 = scalar_lea.vmem %s704_s5, 32  ;;  %s998_s27 = scalar_lea.vmem %s704_s5, 256 }
 0x2d8   :  { %p995_p0 = scmp.ne.s32.totalorder %s704_s5, %s994_s26  ;;  %p999_p1 = scmp.lt.s32.totalorder %s704_s5, %s704_s5 }
 0x2d9   :  { %p1000_p2 = scmp.lt.s32.totalorder %s998_s27, %s994_s26 }
 0x2db   :  { %p1001_p3 = por %p1000_p2, %p999_p1 }
 0x2dd   :  { %p1002_p4 = pnand %p1001_p3, %p995_p0 }
 0x2df   :  { %1005 = shalt.err (!%p1002_p4)
}
 0x2e0   :  { %s1006_s29 = scalar_lea.hbm %s1449_s7, 32 }
 0x2e1   :  { %p1007_p5 = scmp.ne.s32.totalorder %s1449_s7, %s1006_s29  ;;  %p1010_p6 = scmp.lt.u32.totalorder %s1006_s29, %s1449_s7 }
 0x2e3   :  { %p1012_p7 = pnand %p1010_p6, %p1007_p5 }
 0x2e5   :  { %1015 = shalt.err (!%p1012_p7)
}
 0x2e6   :  { %s1020_s10 = smov 32   ;;  %s1021_s11 = smov 2  }
 0x2e7   :  { %709 = dma.vmem_to_hbm [thread:$0]  %s704_s5, 32, %s1449_s7, [#allocation3], %s1020_s10, %s1020_s10, %s1021_s11  }
 0x2e8   :  { %1016 = dma.done.wait [#allocation3], 256  }
 0x2e9   :  { %1017 = vsyncadd [#allocation3], 4294967040 }
 0x2ea   :  { %713 = vsyncpa [#allocation3], 1 }

</bundles_post_ra>
